<compile_context>
chip_gen: v7x
topology: tpu7x:2x2x1
jax: 0.10.0
libtpu: 0.0.40
codegen_flags: <defaults>
</compile_context>

<pallas_src>
import functools

import jax
import jax.numpy as jnp
from jax.experimental import pallas as pl
from jax.experimental.pallas import tpu as pltpu


# ----------------------------------------------------------------------------
# Pallas kernel: one grid step = one chunk of `tt` timesteps of the recurrence.
# The recurrent state lives in vregs inside the chunk and is carried across
# chunks in a small VMEM scratch.
# ----------------------------------------------------------------------------
def _lipschitz_rnn_kernel(wt_ref, by_ref, x0_ref, out_ref, x_scratch,
                          *, tt, n, step):
    # wt_ref : (n, 2n)      fused weight  [ (I+step*A).T | C.T ]
    # by_ref : (1, n)       per-feature bias (broadcast over batch)
    # x0_ref : (bs, n)      initial state, batch-major
    # out_ref: (bs, tt, n)  this chunk's slice of the trajectory
    # x_scratch: (bs, n)    state carried across grid (time-chunk) steps
    g = pl.program_id(0)

    @pl.when(g == 0)
    def _():
        x_scratch[...] = x0_ref[...]

    wt = wt_ref[...]                                       # (n, 2n), stays in vregs
    by = jnp.broadcast_to(by_ref[...], x0_ref.shape)       # hoisted broadcast (bs, n)
    xi = x_scratch[...]                                    # state in registers for the chunk

    # Fully unrolled chunk (tt is a static Python int) -> LLO can overlap the
    # out-store / tanh (EUP) of step j with the MXU push of step j+1.
    for j in range(tt):
        out_ref[:, j, :] = xi                              # lane-dense (last dim = n) store
        z = jnp.dot(xi, wt, preferred_element_type=jnp.float32)   # single MXU push / step
        xi = z[:, :n] + step * jnp.tanh(z[:, n:] + by)     # Euler update folded into z[:, :n]

    x_scratch[...] = xi                                    # carry state to next chunk


def _pick_time_chunk(tmax, max_chunk=256):
    """Largest chunk tt with tmax % tt == 0 and (tt == tmax or tt % 8 == 0)."""
    if tmax <= max_chunk:
        return tmax
    best = None
    for tt in range(8, max_chunk + 1, 8):
        if tmax % tt == 0:
            best = tt
    return best if best is not None else tmax


# ----------------------------------------------------------------------------
# Wrapper: parameter construction (A, C, fused WT) in plain JAX, recurrence in
# the Pallas kernel. Output layout already matches PyTorch: (bs, tmax, n).
# ----------------------------------------------------------------------------
def lipschitz_rnn_forward(x0, params, *, tmax, step):
    """x0: (bs, n) float32 -> (bs, tmax, n) float32."""
    bs, n = x0.shape
    ma = params["MA"]            # (n, n)
    mw = params["MW"]            # (n, n)
    ba_raw = params["bA_raw"]    # scalar (unconstrained parameter, value 0.65)
    bw_raw = params["bW_raw"]    # scalar
    by_w = params["by_weight"]   # (n, 1)
    yA = params["yA"]
    yW = params["yW"]

    # Exp_01 parametrization: weight -> 0.5 * exp(-Z**2) + 0.5
    bA = 0.5 * jnp.exp(-(ba_raw ** 2)) + 0.5
    bW = 0.5 * jnp.exp(-(bw_raw ** 2)) + 0.5

    eye = jnp.eye(n, dtype=jnp.float32)
    # Note: the reference code (faithfully reproduced) mixes bA and bW in C.
    A = (1.0 - bA) * (ma + ma.T) + bA * (ma - ma.T) - yA * eye
    C = (1.0 - bA) * (mw + mw.T) + bW * (mw - mw.T) - yW * eye

    # Fused weight: z = xi @ WT  ==  [ xi @ (I + step*A).T  |  xi @ C.T ]
    wt = jnp.concatenate([(eye + step * A).T, C.T], axis=1)   # (n, 2n)
    by_row = by_w.reshape(1, n).astype(jnp.float32)           # (1, n)

    tt = _pick_time_chunk(tmax)
    n_chunks = tmax // tt

    kernel = functools.partial(_lipschitz_rnn_kernel, tt=tt, n=n, step=float(step))

    out = pl.pallas_call(
        kernel,
        out_shape=jax.ShapeDtypeStruct((bs, tmax, n), jnp.float32),
        grid_spec=pltpu.PrefetchScalarGridSpec(
            num_scalar_prefetch=0,
            grid=(n_chunks,),
            in_specs=[
                pl.BlockSpec((n, 2 * n), lambda t: (0, 0)),   # fused weight (resident)
                pl.BlockSpec((1, n), lambda t: (0, 0)),       # bias (resident)
                pl.BlockSpec((bs, n), lambda t: (0, 0)),      # initial state (resident)
            ],
            out_specs=pl.BlockSpec((bs, tt, n), lambda t: (0, t, 0)),
            scratch_shapes=[pltpu.VMEM((bs, n), jnp.float32)],
        ),
        compiler_params=pltpu.CompilerParams(
            # Sequential dependency across time-chunks via the state scratch.
            dimension_semantics=("arbitrary",)),
    )(wt, by_row, x0)

    return out   # already (bs, tmax, n) -- no wrapper transpose needed


# ----------------------------------------------------------------------------
# Pure-JAX reference (un-fused original math) for a correctness check.
# ----------------------------------------------------------------------------
def lipschitz_rnn_reference(x0, params, *, tmax, step):
    bs, n = x0.shape
    ma, mw = params["MA"], params["MW"]
    bA = 0.5 * jnp.exp(-(params["bA_raw"] ** 2)) + 0.5
    bW = 0.5 * jnp.exp(-(params["bW_raw"] ** 2)) + 0.5
    eye = jnp.eye(n, dtype=jnp.float32)
    A = (1.0 - bA) * (ma + ma.T) + bA * (ma - ma.T) - params["yA"] * eye
    C = (1.0 - bA) * (mw + mw.T) + bW * (mw - mw.T) - params["yW"] * eye
    by = jnp.tile(params["by_weight"], (1, bs))
    xi = x0.T
    xs = [xi]
    for _ in range(tmax - 1):
        yi = C @ xi + by
        xi = xi + step * (A @ xi + eye @ jnp.tanh(yi))
        xs.append(xi)
    x = jnp.stack(xs, axis=0)            # (tmax, n, bs)
    return jnp.transpose(x, (2, 0, 1))   # (bs, tmax, n)


if __name__ == "__main__":
    n = 32
    bs = 8
    tmax = 8
    step = 0.1

    key = jax.random.PRNGKey(0)
    k_ma, k_mw, k_x0 = jax.random.split(key, 3)

    # Deterministic parameter init (nn.Linear-style uniform for MA/MW;
    # by_ weight zeros; bA/bW unconstrained params = 0.65 as in __init__).
    bound = 1.0 / (n ** 0.5)
    params = {
        "MA": jax.random.uniform(k_ma, (n, n), jnp.float32, -bound, bound),
        "MW": jax.random.uniform(k_mw, (n, n), jnp.float32, -bound, bound),
        "bA_raw": jnp.float32(0.65),
        "bW_raw": jnp.float32(0.65),
        "by_weight": jnp.zeros((n, 1), jnp.float32),
        "yA": jnp.float32(0.001),
        "yW": jnp.float32(0.001),
    }

    x0 = jax.random.normal(k_x0, (bs, n), jnp.float32)

    out = lipschitz_rnn_forward(x0, params, tmax=tmax, step=step)
    out = jax.block_until_ready(out)

    ref = lipschitz_rnn_reference(x0, params, tmax=tmax, step=step)
    assert out.shape == (bs, tmax, n), out.shape
    assert jnp.allclose(out, ref, rtol=1e-4, atol=1e-4), (
        float(jnp.max(jnp.abs(out - ref))))

    print("KERNEL_OK")
</pallas_src>

<mosaic_0001>
module attributes {stable_mosaic.version = 11 : i64} {
  func.func @_lipschitz_rnn_kernel(%arg0: i32, %arg1: memref<32x64xf32, #tpu.memory_space<vmem>>, %arg2: memref<1x32xf32, #tpu.memory_space<vmem>>, %arg3: memref<8x32xf32, #tpu.memory_space<vmem>>, %arg4: memref<8x8x32xf32, #tpu.memory_space<vmem>>, %arg5: memref<8x32xf32, #tpu.memory_space<vmem>>) attributes {dimension_semantics = [#tpu.dimension_semantics<arbitrary>], iteration_bounds = array<i64: 1>, scalar_prefetch = 0 : i64, scratch_operands = 1 : i64, tpu.core_type = #tpu.core_type<tc>, window_params = [{pipeline_mode = #tpu.pipeline_mode<synchronous>, transform_indices = @transform_0, window_bounds = array<i64: 32, 64>}, {pipeline_mode = #tpu.pipeline_mode<synchronous>, transform_indices = @transform_1, window_bounds = array<i64: 1, 32>}, {pipeline_mode = #tpu.pipeline_mode<synchronous>, transform_indices = @transform_2, window_bounds = array<i64: 8, 32>}, {transform_indices = @transform_3, window_bounds = array<i64: 8, 8, 32>}]} {
    %c0_i32 = arith.constant 0 : i32
    %0 = arith.cmpi eq, %arg0, %c0_i32 : i32
    %1 = arith.extui %0 : i1 to i32
    %c0_i32_0 = arith.constant 0 : i32
    %2 = arith.cmpi ne, %1, %c0_i32_0 : i32
    scf.if %2 {
      %c0_40 = arith.constant 0 : index
      %c0_41 = arith.constant 0 : index
      %97 = vector.load %arg3[%c0_40, %c0_41] : memref<8x32xf32, #tpu.memory_space<vmem>>, vector<8x32xf32>
      %c0_42 = arith.constant 0 : index
      %c0_43 = arith.constant 0 : index
      %98 = vector.load %arg5[%c0_42, %c0_43] : memref<8x32xf32, #tpu.memory_space<vmem>>, vector<8x32xf32>
      tpu.vector_store %arg5[%c0_42, %c0_43], %97 {strides = array<i32>} : memref<8x32xf32, #tpu.memory_space<vmem>>, vector<8x32xf32>,
    } else {
    }
    %c0 = arith.constant 0 : index
    %c0_1 = arith.constant 0 : index
    %3 = vector.load %arg1[%c0, %c0_1] : memref<32x64xf32, #tpu.memory_space<vmem>>, vector<32x64xf32>
    %c0_2 = arith.constant 0 : index
    %c0_3 = arith.constant 0 : index
    %4 = vector.load %arg2[%c0_2, %c0_3] : memref<1x32xf32, #tpu.memory_space<vmem>>, vector<1x32xf32>
    %5 = vector.shape_cast %4 : vector<1x32xf32> to vector<1x32xf32>
    %6 = vector.broadcast %5 : vector<1x32xf32> to vector<8x32xf32>
    %c0_4 = arith.constant 0 : index
    %c0_5 = arith.constant 0 : index
    %7 = vector.load %arg5[%c0_4, %c0_5] : memref<8x32xf32, #tpu.memory_space<vmem>>, vector<8x32xf32>
    %c0_6 = arith.constant 0 : index
    %c0_7 = arith.constant 0 : index
    %c0_8 = arith.constant 0 : index
    %8 = vector.load %arg4[%c0_6, %c0_7, %c0_8] : memref<8x8x32xf32, #tpu.memory_space<vmem>>, vector<8x1x32xf32>
    %9 = vector.shape_cast %8 : vector<8x1x32xf32> to vector<8x32xf32>
    %10 = vector.shape_cast %7 : vector<8x32xf32> to vector<8x1x32xf32>
    tpu.vector_store %arg4[%c0_6, %c0_7, %c0_8], %10 {strides = array<i32>} : memref<8x8x32xf32, #tpu.memory_space<vmem>>, vector<8x1x32xf32>,
    %cst = arith.constant dense<0.000000e+00> : vector<8x64xf32>
    %11 = tpu.matmul %7, %3, %cst {dimension_numbers = #tpu.dot_dimension_numbers<[1], [0], [0], [1], [0, 0, 1, 1], [], []>} : vector<8x32xf32>, vector<32x64xf32>, vector<8x64xf32> -> vector<8x64xf32>
    %12 = vector.extract_strided_slice %11 {offsets = [0, 0], sizes = [8, 32], strides = [1, 1]} : vector<8x64xf32> to vector<8x32xf32>
    %13 = vector.extract_strided_slice %11 {offsets = [0, 32], sizes = [8, 32], strides = [1, 1]} : vector<8x64xf32> to vector<8x32xf32>
    %14 = arith.addf %13, %6 : vector<8x32xf32>
    %15 = math.tanh %14 : vector<8x32xf32>
    %cst_9 = arith.constant 1.000000e-01 : f32
    %16 = vector.broadcast %cst_9 : f32 to vector<8x32xf32>
    %17 = arith.mulf %16, %15 : vector<8x32xf32>
    %18 = arith.addf %12, %17 : vector<8x32xf32>
    %c0_10 = arith.constant 0 : index
    %c1 = arith.constant 1 : index
    %c0_11 = arith.constant 0 : index
    %19 = vector.load %arg4[%c0_10, %c1, %c0_11] : memref<8x8x32xf32, #tpu.memory_space<vmem>>, vector<8x1x32xf32>
    %20 = vector.shape_cast %19 : vector<8x1x32xf32> to vector<8x32xf32>
    %21 = vector.shape_cast %18 : vector<8x32xf32> to vector<8x1x32xf32>
    tpu.vector_store %arg4[%c0_10, %c1, %c0_11], %21 {strides = array<i32>} : memref<8x8x32xf32, #tpu.memory_space<vmem>>, vector<8x1x32xf32>,
    %cst_12 = arith.constant dense<0.000000e+00> : vector<8x64xf32>
    %22 = tpu.matmul %18, %3, %cst_12 {dimension_numbers = #tpu.dot_dimension_numbers<[1], [0], [0], [1], [0, 0, 1, 1], [], []>} : vector<8x32xf32>, vector<32x64xf32>, vector<8x64xf32> -> vector<8x64xf32>
    %23 = vector.extract_strided_slice %22 {offsets = [0, 0], sizes = [8, 32], strides = [1, 1]} : vector<8x64xf32> to vector<8x32xf32>
    %24 = vector.extract_strided_slice %22 {offsets = [0, 32], sizes = [8, 32], strides = [1, 1]} : vector<8x64xf32> to vector<8x32xf32>
    %25 = arith.addf %24, %6 : vector<8x32xf32>
    %26 = math.tanh %25 : vector<8x32xf32>
    %cst_13 = arith.constant 1.000000e-01 : f32
    %27 = vector.broadcast %cst_13 : f32 to vector<8x32xf32>
    %28 = arith.mulf %27, %26 : vector<8x32xf32>
    %29 = arith.addf %23, %28 : vector<8x32xf32>
    %c0_14 = arith.constant 0 : index
    %c2 = arith.constant 2 : index
    %c0_15 = arith.constant 0 : index
    %30 = vector.load %arg4[%c0_14, %c2, %c0_15] : memref<8x8x32xf32, #tpu.memory_space<vmem>>, vector<8x1x32xf32>
    %31 = vector.shape_cast %30 : vector<8x1x32xf32> to vector<8x32xf32>
    %32 = vector.shape_cast %29 : vector<8x32xf32> to vector<8x1x32xf32>
    tpu.vector_store %arg4[%c0_14, %c2, %c0_15], %32 {strides = array<i32>} : memref<8x8x32xf32, #tpu.memory_space<vmem>>, vector<8x1x32xf32>,
    %cst_16 = arith.constant dense<0.000000e+00> : vector<8x64xf32>
    %33 = tpu.matmul %29, %3, %cst_16 {dimension_numbers = #tpu.dot_dimension_numbers<[1], [0], [0], [1], [0, 0, 1, 1], [], []>} : vector<8x32xf32>, vector<32x64xf32>, vector<8x64xf32> -> vector<8x64xf32>
    %34 = vector.extract_strided_slice %33 {offsets = [0, 0], sizes = [8, 32], strides = [1, 1]} : vector<8x64xf32> to vector<8x32xf32>
    %35 = vector.extract_strided_slice %33 {offsets = [0, 32], sizes = [8, 32], strides = [1, 1]} : vector<8x64xf32> to vector<8x32xf32>
    %36 = arith.addf %35, %6 : vector<8x32xf32>
    %37 = math.tanh %36 : vector<8x32xf32>
    %cst_17 = arith.constant 1.000000e-01 : f32
    %38 = vector.broadcast %cst_17 : f32 to vector<8x32xf32>
    %39 = arith.mulf %38, %37 : vector<8x32xf32>
    %40 = arith.addf %34, %39 : vector<8x32xf32>
    %c0_18 = arith.constant 0 : index
    %c3 = arith.constant 3 : index
    %c0_19 = arith.constant 0 : index
    %41 = vector.load %arg4[%c0_18, %c3, %c0_19] : memref<8x8x32xf32, #tpu.memory_space<vmem>>, vector<8x1x32xf32>
    %42 = vector.shape_cast %41 : vector<8x1x32xf32> to vector<8x32xf32>
    %43 = vector.shape_cast %40 : vector<8x32xf32> to vector<8x1x32xf32>
    tpu.vector_store %arg4[%c0_18, %c3, %c0_19], %43 {strides = array<i32>} : memref<8x8x32xf32, #tpu.memory_space<vmem>>, vector<8x1x32xf32>,
    %cst_20 = arith.constant dense<0.000000e+00> : vector<8x64xf32>
    %44 = tpu.matmul %40, %3, %cst_20 {dimension_numbers = #tpu.dot_dimension_numbers<[1], [0], [0], [1], [0, 0, 1, 1], [], []>} : vector<8x32xf32>, vector<32x64xf32>, vector<8x64xf32> -> vector<8x64xf32>
    %45 = vector.extract_strided_slice %44 {offsets = [0, 0], sizes = [8, 32], strides = [1, 1]} : vector<8x64xf32> to vector<8x32xf32>
    %46 = vector.extract_strided_slice %44 {offsets = [0, 32], sizes = [8, 32], strides = [1, 1]} : vector<8x64xf32> to vector<8x32xf32>
    %47 = arith.addf %46, %6 : vector<8x32xf32>
    %48 = math.tanh %47 : vector<8x32xf32>
    %cst_21 = arith.constant 1.000000e-01 : f32
    %49 = vector.broadcast %cst_21 : f32 to vector<8x32xf32>
    %50 = arith.mulf %49, %48 : vector<8x32xf32>
    %51 = arith.addf %45, %50 : vector<8x32xf32>
    %c0_22 = arith.constant 0 : index
    %c4 = arith.constant 4 : index
    %c0_23 = arith.constant 0 : index
    %52 = vector.load %arg4[%c0_22, %c4, %c0_23] : memref<8x8x32xf32, #tpu.memory_space<vmem>>, vector<8x1x32xf32>
    %53 = vector.shape_cast %52 : vector<8x1x32xf32> to vector<8x32xf32>
    %54 = vector.shape_cast %51 : vector<8x32xf32> to vector<8x1x32xf32>
    tpu.vector_store %arg4[%c0_22, %c4, %c0_23], %54 {strides = array<i32>} : memref<8x8x32xf32, #tpu.memory_space<vmem>>, vector<8x1x32xf32>,
    %cst_24 = arith.constant dense<0.000000e+00> : vector<8x64xf32>
    %55 = tpu.matmul %51, %3, %cst_24 {dimension_numbers = #tpu.dot_dimension_numbers<[1], [0], [0], [1], [0, 0, 1, 1], [], []>} : vector<8x32xf32>, vector<32x64xf32>, vector<8x64xf32> -> vector<8x64xf32>
    %56 = vector.extract_strided_slice %55 {offsets = [0, 0], sizes = [8, 32], strides = [1, 1]} : vector<8x64xf32> to vector<8x32xf32>
    %57 = vector.extract_strided_slice %55 {offsets = [0, 32], sizes = [8, 32], strides = [1, 1]} : vector<8x64xf32> to vector<8x32xf32>
    %58 = arith.addf %57, %6 : vector<8x32xf32>
    %59 = math.tanh %58 : vector<8x32xf32>
    %cst_25 = arith.constant 1.000000e-01 : f32
    %60 = vector.broadcast %cst_25 : f32 to vector<8x32xf32>
    %61 = arith.mulf %60, %59 : vector<8x32xf32>
    %62 = arith.addf %56, %61 : vector<8x32xf32>
    %c0_26 = arith.constant 0 : index
    %c5 = arith.constant 5 : index
    %c0_27 = arith.constant 0 : index
    %63 = vector.load %arg4[%c0_26, %c5, %c0_27] : memref<8x8x32xf32, #tpu.memory_space<vmem>>, vector<8x1x32xf32>
    %64 = vector.shape_cast %63 : vector<8x1x32xf32> to vector<8x32xf32>
    %65 = vector.shape_cast %62 : vector<8x32xf32> to vector<8x1x32xf32>
    tpu.vector_store %arg4[%c0_26, %c5, %c0_27], %65 {strides = array<i32>} : memref<8x8x32xf32, #tpu.memory_space<vmem>>, vector<8x1x32xf32>,
    %cst_28 = arith.constant dense<0.000000e+00> : vector<8x64xf32>
    %66 = tpu.matmul %62, %3, %cst_28 {dimension_numbers = #tpu.dot_dimension_numbers<[1], [0], [0], [1], [0, 0, 1, 1], [], []>} : vector<8x32xf32>, vector<32x64xf32>, vector<8x64xf32> -> vector<8x64xf32>
    %67 = vector.extract_strided_slice %66 {offsets = [0, 0], sizes = [8, 32], strides = [1, 1]} : vector<8x64xf32> to vector<8x32xf32>
    %68 = vector.extract_strided_slice %66 {offsets = [0, 32], sizes = [8, 32], strides = [1, 1]} : vector<8x64xf32> to vector<8x32xf32>
    %69 = arith.addf %68, %6 : vector<8x32xf32>
    %70 = math.tanh %69 : vector<8x32xf32>
    %cst_29 = arith.constant 1.000000e-01 : f32
    %71 = vector.broadcast %cst_29 : f32 to vector<8x32xf32>
    %72 = arith.mulf %71, %70 : vector<8x32xf32>
    %73 = arith.addf %67, %72 : vector<8x32xf32>
    %c0_30 = arith.constant 0 : index
    %c6 = arith.constant 6 : index
    %c0_31 = arith.constant 0 : index
    %74 = vector.load %arg4[%c0_30, %c6, %c0_31] : memref<8x8x32xf32, #tpu.memory_space<vmem>>, vector<8x1x32xf32>
    %75 = vector.shape_cast %74 : vector<8x1x32xf32> to vector<8x32xf32>
    %76 = vector.shape_cast %73 : vector<8x32xf32> to vector<8x1x32xf32>
    tpu.vector_store %arg4[%c0_30, %c6, %c0_31], %76 {strides = array<i32>} : memref<8x8x32xf32, #tpu.memory_space<vmem>>, vector<8x1x32xf32>,
    %cst_32 = arith.constant dense<0.000000e+00> : vector<8x64xf32>
    %77 = tpu.matmul %73, %3, %cst_32 {dimension_numbers = #tpu.dot_dimension_numbers<[1], [0], [0], [1], [0, 0, 1, 1], [], []>} : vector<8x32xf32>, vector<32x64xf32>, vector<8x64xf32> -> vector<8x64xf32>
    %78 = vector.extract_strided_slice %77 {offsets = [0, 0], sizes = [8, 32], strides = [1, 1]} : vector<8x64xf32> to vector<8x32xf32>
    %79 = vector.extract_strided_slice %77 {offsets = [0, 32], sizes = [8, 32], strides = [1, 1]} : vector<8x64xf32> to vector<8x32xf32>
    %80 = arith.addf %79, %6 : vector<8x32xf32>
    %81 = math.tanh %80 : vector<8x32xf32>
    %cst_33 = arith.constant 1.000000e-01 : f32
    %82 = vector.broadcast %cst_33 : f32 to vector<8x32xf32>
    %83 = arith.mulf %82, %81 : vector<8x32xf32>
    %84 = arith.addf %78, %83 : vector<8x32xf32>
    %c0_34 = arith.constant 0 : index
    %c7 = arith.constant 7 : index
    %c0_35 = arith.constant 0 : index
    %85 = vector.load %arg4[%c0_34, %c7, %c0_35] : memref<8x8x32xf32, #tpu.memory_space<vmem>>, vector<8x1x32xf32>
    %86 = vector.shape_cast %85 : vector<8x1x32xf32> to vector<8x32xf32>
    %87 = vector.shape_cast %84 : vector<8x32xf32> to vector<8x1x32xf32>
    tpu.vector_store %arg4[%c0_34, %c7, %c0_35], %87 {strides = array<i32>} : memref<8x8x32xf32, #tpu.memory_space<vmem>>, vector<8x1x32xf32>,
    %cst_36 = arith.constant dense<0.000000e+00> : vector<8x64xf32>
    %88 = tpu.matmul %84, %3, %cst_36 {dimension_numbers = #tpu.dot_dimension_numbers<[1], [0], [0], [1], [0, 0, 1, 1], [], []>} : vector<8x32xf32>, vector<32x64xf32>, vector<8x64xf32> -> vector<8x64xf32>
    %89 = vector.extract_strided_slice %88 {offsets = [0, 0], sizes = [8, 32], strides = [1, 1]} : vector<8x64xf32> to vector<8x32xf32>
    %90 = vector.extract_strided_slice %88 {offsets = [0, 32], sizes = [8, 32], strides = [1, 1]} : vector<8x64xf32> to vector<8x32xf32>
    %91 = arith.addf %90, %6 : vector<8x32xf32>
    %92 = math.tanh %91 : vector<8x32xf32>
    %cst_37 = arith.constant 1.000000e-01 : f32
    %93 = vector.broadcast %cst_37 : f32 to vector<8x32xf32>
    %94 = arith.mulf %93, %92 : vector<8x32xf32>
    %95 = arith.addf %89, %94 : vector<8x32xf32>
    %c0_38 = arith.constant 0 : index
    %c0_39 = arith.constant 0 : index
    %96 = vector.load %arg5[%c0_38, %c0_39] : memref<8x32xf32, #tpu.memory_space<vmem>>, vector<8x32xf32>
    tpu.vector_store %arg5[%c0_38, %c0_39], %95 {strides = array<i32>} : memref<8x32xf32, #tpu.memory_space<vmem>>, vector<8x32xf32>,
    return
  }
  func.func @transform_0(%arg0: i32) -> (i32, i32) {
    %c0_i32 = arith.constant 0 : i32
    %c0_i32_0 = arith.constant 0 : i32
    %c0_i32_1 = arith.constant 0 : i32
    return %c0_i32, %c0_i32_0 : i32, i32
  }
  func.func @transform_1(%arg0: i32) -> (i32, i32) {
    %c0_i32 = arith.constant 0 : i32
    %c0_i32_0 = arith.constant 0 : i32
    %c0_i32_1 = arith.constant 0 : i32
    return %c0_i32, %c0_i32_0 : i32, i32
  }
  func.func @transform_2(%arg0: i32) -> (i32, i32) {
    %c0_i32 = arith.constant 0 : i32
    %c0_i32_0 = arith.constant 0 : i32
    %c0_i32_1 = arith.constant 0 : i32
    return %c0_i32, %c0_i32_0 : i32, i32
  }
  func.func @transform_3(%arg0: i32) -> (i32, i32, i32) {
    %c0_i32 = arith.constant 0 : i32
    %c0_i32_0 = arith.constant 0 : i32
    %c0_i32_1 = arith.constant 0 : i32
    return %c0_i32, %arg0, %c0_i32_0 : i32, i32, i32
  }
}

</mosaic_0001>

<bundles_post_ra>
// kernel: tpu_custom_call.1
= control target key start
LH: loop header
LB: loop body
LE: loop exit
PB: predicated region body
PF: predicated region fallthrough
CT: control target
= control target key end

     0   :  { %8 = vsyncpa [#allocation4], 0  ;;  %s1806_s0 = inlined_call_operand.hbm [shape: f32[32,64], index: 0, kind: input, shape index: {}]   ;;  %s1807_s1 = inlined_call_operand.vmem [shape: f32[1,32], index: 1, kind: input, shape index: {}]   ;;  %s1808_s2 = inlined_call_operand.hbm [shape: f32[8,32], index: 2, kind: input, shape index: {}]   ;;  %s1809_s3 = inlined_call_operand.hbm [shape: f32[8,8,32], index: 3, kind: output, shape index: {}]  }
   0x1   :  { %9 = vsyncpa [#allocation7], 0 }
   0x2   :  { %10 = vsyncpa [#allocation5], 0  ;;  %s1536_s12 = smov [#allocation3]   ;;  %s1464_s16 = scalar_lea.hbm %s1806_s0, 512 }
   0x3   :  { %s16_s13 = sshll.u32 %s1536_s12, 4  ;;  %p1465_p0 = scmp.ne.s32.totalorder %s1806_s0, %s1464_s16  ;;  %s17_s13 = int_to_ptr.vmem [resolvable:$true] %s16_s13 }
   0x4   :  { %p1468_p1 = scmp.lt.u32.totalorder %s1464_s16, %s1806_s0 }
   0x6   :  { %p1470_p2 = pnand %p1468_p1, %p1465_p0 }
   0x8   :  { %1473 = shalt.err (!%p1470_p2)
}
   0x9   :  { %s1474_s21 = scalar_lea.vmem %s17_s13, 512  ;;  %p1479_p4 = scmp.lt.s32.totalorder %s17_s13, %s17_s13 }
   0xa   :  { %p1475_p3 = scmp.ne.s32.totalorder %s17_s13, %s1474_s21  ;;  %p1480_p5 = scmp.lt.s32.totalorder %s1474_s21, %s1474_s21 }
   0xc   :  { %p1481_p6 = por %p1480_p5, %p1479_p4 }
   0xe   :  { %p1482_p7 = pnand %p1481_p6, %p1475_p3 }
  0x10   :  { %1485 = shalt.err (!%p1482_p7)
}
  0x11   :  { %s1537_s22 = smov 128   ;;  %s1538_s23 = smov 8  }
  0x12   :  { %22 = dma.hbm_to_vmem [thread:$0]  %s1806_s0, 512, %s17_s13, [#allocation4], %s1537_s22, %s1537_s22, %s1538_s23  }
  0x13   :  { %s1539_s26 = smov [#allocation6]   ;;  %s1486_s30 = scalar_lea.hbm %s1808_s2, 128 }
  0x14   :  { %s31_s27 = sshll.u32 %s1539_s26, 4  ;;  %p1487_p8 = scmp.ne.s32.totalorder %s1808_s2, %s1486_s30  ;;  %s32_s27 = int_to_ptr.vmem [resolvable:$true] %s31_s27 }
  0x15   :  { %p1490_p9 = scmp.lt.u32.totalorder %s1486_s30, %s1808_s2 }
  0x17   :  { %p1492_p10 = pnand %p1490_p9, %p1487_p8 }
  0x19   :  { %1495 = shalt.err (!%p1492_p10)
}
  0x1a   :  { %s1496_s8 = scalar_lea.vmem %s32_s27, 128  ;;  %p1501_p12 = scmp.lt.s32.totalorder %s32_s27, %s32_s27 }
  0x1b   :  { %p1497_p11 = scmp.ne.s32.totalorder %s32_s27, %s1496_s8  ;;  %p1502_p13 = scmp.lt.s32.totalorder %s1496_s8, %s1496_s8 }
  0x1d   :  { %p1503_p0 = por %p1502_p13, %p1501_p12 }
  0x1f   :  { %p1504_p1 = pnand %p1503_p0, %p1497_p11 }
  0x21   :  { %1507 = shalt.err (!%p1504_p1)
}
  0x22   :  { %34 = dma.hbm_to_vmem [thread:$0]  %s1808_s2, 128, %s32_s27, [#allocation7]  }
  0x23   :  { %1530 = dma.done.wait [#allocation4], 512  }
  0x24   :  { %1531 = vsyncadd [#allocation4], 4294966784 }
  0x25   :  { %1532 = dma.done.wait [#allocation7], 128  }
  0x26   :  { %1533 = vsyncadd [#allocation7], 4294967168  ;;  %v1540_v0 = vmov 0.0|0.0   ;;  %vm1541_vm0 = vmmov 0   ;;  %v1542_v1 = vmov 0.0   ;;  %vm46_vm1 = vcmask 261120  }
  0x27   :  { %1388 = vmatprep.subr.bf16.mxu0 %v1540_v0  ;;  %1308 = vmatprep.mubr.msk.f32.mxu0 %vm1541_vm0, %v1542_v1  ;;  %v48_v2 = vld [vmem:[#allocation3] sm:$0xff]  ;;  %v49_v3 = vld [vmem:[#allocation3 + $0x8] sm:$0xff]  ;;  %v50_v4 = vld [vmem:[#allocation3 + $0x10] sm:$0xff]  ;;  %v1543_v5 = vmov 1966171168   ;;  %v64_v7 = vlaneseq  ;;  %s1544_s11 = smov 32  }
  0x28   :  { %1394 = vmatprep.subr.bf16.mxu1 %v1540_v0  ;;  %1319 = vmatprep.mubr.msk.f32.mxu1 %vm1541_vm0, %v1542_v1  ;;  %v62_v6 = vunpack.c.l.s4 %v1543_v5  ;;  %v1600_v8 = vpack.c.bf16 %v49_v3, %v48_v2  ;;  %v51_v9 = vld [vmem:[#allocation3 + $0x18] sm:$0xff]  ;;  %v45_v10 = vld [vmem:[#allocation6] sm:$0xff]  ;;  %vm117_vm2 = vcmask 253952   ;;  %s1546_s12 = smov [#allocation8]  }
  0x29   :  { %v1251_v11 = vld [vmem:[%s1807_s1] ss:$0 sm:$0xff]  ;;  %47 = vst.msk [vmem:[#allocation2] sm:$0xff] %vm46_vm1, %v45_v10  ;;  %v1607_v12 = vpack.c.bf16 %v51_v9, %v50_v4  ;;  %v65_v14 = vshrl.u32 %v64_v7, 7  ;;  %s1545_s1 = smov 96   ;;  %s1238_s13 = sshll.u32 %s1546_s12, 4  ;;  %s1239_s13 = int_to_ptr.vmem [resolvable:$true] %s1238_s13 }
  0x2a   :  { %199 = vrot.lane.b32.xlu0 %v1251_v11, %s1544_s11  ;;  %1390 = vmatpush3.bf16.msra.mxu0 %v1600_v8  ;;  %v63_v13 = vunpack.c.0.s8 %v62_v6  ;;  %s1508_s14 = scalar_lea.vmem %s1239_s13, 1024  ;;  %p1513_p3 = scmp.lt.s32.totalorder %s1239_s13, %s1239_s13 }
  0x2b   :  { %1396 = vmatpush3.bf16.msra.mxu1 %v1600_v8  ;;  %1391 = vmatprep.subr.bf16.mxu0 %v1540_v0  ;;  %p1509_p2 = scmp.ne.s32.totalorder %s1239_s13, %s1508_s14  ;;  %p1514_p4 = scmp.lt.s32.totalorder %s1508_s14, %s1508_s14 }
  0x2c   :  { %1397 = vmatprep.subr.bf16.mxu1 %v1540_v0  ;;  %v1614_v15 = vsub.s32 %v63_v13, %v65_v14 }
  0x2d   :  { %p1515_p5 = por %p1514_p4, %p1513_p3 }
  0x2e   :  { %1393 = vmatpush3.bf16.msra.mxu0 %v1607_v12 }
  0x2f   :  { %1399 = vmatpush3.bf16.msra.mxu1 %v1607_v12  ;;  %1400 = vmatprep.subr.bf16.mxu0 %v1540_v0  ;;  %p1516_p6 = pnand %p1515_p5, %p1509_p2 }
  0x30   :  { %1406 = vmatprep.subr.bf16.mxu1 %v1540_v0  ;;  %v58_v16 = vld [vmem:[#allocation2] sm:$0xff] }
  0x31   :  { %v60_v17 = vcombine.high %v58_v16, %v58_v16  ;;  %v67_v18 = vrot.slane %v58_v16, %v1614_v15  ;;  %1309 = vmatmul.mubr.msk.f32.vlgmr.msra.gmra.mrb[0].mxu0 %vm46_vm1, %v58_v16 }
  0x32   :  { %1402 = vmatpush3.bf16.msra.mxu0 %v1600_v8  ;;  %1330 = vmatprep.mubr.msk.f32.mxu0 %vm1541_vm0, %v1542_v1 }
  0x33   :  { %v74_v19 = vrot.slane %v60_v17, %v1614_v15  ;;  %v75_v20 = vcombine.high %v67_v18, %v67_v18  ;;  %v83_v21 = vrot.slane %v67_v18, %v1614_v15  ;;  %1403 = vmatprep.subr.bf16.mxu0 %v1540_v0 }
  0x35   :  { %v76_v22 = vcombine.high %v74_v19, %v74_v19  ;;  %v90_v23 = vrot.slane %v74_v19, %v1614_v15  ;;  %v97_v24 = vrot.slane %v75_v20, %v1614_v15  ;;  %v105_v25 = vcombine.high %v83_v21, %v83_v21  ;;  %118 = vst.msk [vmem:[#allocation8] sm:$0x1] %vm117_vm2, %v83_v21 }
  0x36   :  { %1405 = vmatpush3.bf16.msra.mxu0 %v1607_v12 }
  0x37   :  { %v104_v26 = vrot.slane %v76_v22, %v1614_v15  ;;  %v106_v27 = vcombine.high %v90_v23, %v90_v23  ;;  %v107_v28 = vcombine.high %v97_v24, %v97_v24  ;;  %119 = vst.msk [vmem:[#allocation8 + $0x8] sm:$0x1] %vm117_vm2, %v97_v24  ;;  %120 = vst.msk [vmem:[#allocation8 + $0x10] sm:$0x1] %vm117_vm2, %v105_v25  ;;  %1412 = vmatprep.subr.bf16.mxu0 %v1540_v0 }
  0x38   :  { %122 = vst.msk [vmem:[#allocation8 + $0x20] sm:$0x1] %vm117_vm2, %v90_v23 }
  0x39   :  { %v108_v29 = vcombine.high %v104_v26, %v104_v26  ;;  %121 = vst.msk [vmem:[#allocation8 + $0x18] sm:$0x1] %vm117_vm2, %v107_v28  ;;  %123 = vst.msk [vmem:[#allocation8 + $0x28] sm:$0x1] %vm117_vm2, %v104_v26 }
  0x3a   :  { %124 = vst.msk [vmem:[#allocation8 + $0x30] sm:$0x1] %vm117_vm2, %v106_v27 }
  0x3b   :  { %125 = vst.msk [vmem:[#allocation8 + $0x38] sm:$0x1] %vm117_vm2, %v108_v29 }
  0x9c   :  { %v1639_v30 = vpop.permute.xlu0 %199 }
 0x104   :  { %v195_v31 = vpop.f32.mrb[0].mxu0 }
 0x105   :  { %v202_v32 = vadd.f32 %v1639_v30, %v195_v31  ;;  %v1310_v33 = vpop.f32.mrb[1].mxu0 }
 0x107   :  { %1448 = vtanh.f32 %v202_v32 }
 0x111   :  { %v1449_v34 = vpop.eup %1448 }
 0x112   :  { %v204_v35 = vmul.f32 0.1, %v1449_v34 }
 0x114   :  { %206 = vrot.lane.b32.xlu0 %v204_v35, %s1545_s1 }
 0x186   :  { %v207_v36 = vpop.permute.xlu0 %206 }
 0x187   :  { %v209_v37 = vadd.f32 %v207_v36, %v195_v31 }
 0x189   :  { %v211_v38 = vcombine.high %v209_v37, %v209_v37  ;;  %v218_v39 = vrot.slane %v209_v37, %v1614_v15  ;;  %1320 = vmatmul.mubr.msk.f32.vlgmr.msra.gmra.mrb[0].mxu1 %vm46_vm1, %v209_v37 }
 0x18a   :  { %1408 = vmatpush3.bf16.msra.mxu1 %v1600_v8  ;;  %1341 = vmatprep.mubr.msk.f32.mxu1 %vm1541_vm0, %v1542_v1 }
 0x18b   :  { %v225_v40 = vrot.slane %v211_v38, %v1614_v15  ;;  %v226_v41 = vcombine.high %v218_v39, %v218_v39  ;;  %v234_v42 = vrot.slane %v218_v39, %v1614_v15  ;;  %1409 = vmatprep.subr.bf16.mxu1 %v1540_v0 }
 0x18d   :  { %v227_v43 = vcombine.high %v225_v40, %v225_v40  ;;  %v241_v44 = vrot.slane %v225_v40, %v1614_v15  ;;  %v248_v45 = vrot.slane %v226_v41, %v1614_v15  ;;  %v256_v46 = vcombine.high %v234_v42, %v234_v42  ;;  %268 = vst.msk [vmem:[#allocation8 + $0x1] sm:$0x1] %vm117_vm2, %v234_v42 }
 0x18e   :  { %1411 = vmatpush3.bf16.msra.mxu1 %v1607_v12 }
 0x18f   :  { %v255_v47 = vrot.slane %v227_v43, %v1614_v15  ;;  %v257_v48 = vcombine.high %v241_v44, %v241_v44  ;;  %v258_v49 = vcombine.high %v248_v45, %v248_v45  ;;  %269 = vst.msk [vmem:[#allocation8 + $0x9] sm:$0x1] %vm117_vm2, %v248_v45  ;;  %270 = vst.msk [vmem:[#allocation8 + $0x11] sm:$0x1] %vm117_vm2, %v256_v46  ;;  %1418 = vmatprep.subr.bf16.mxu1 %v1540_v0 }
 0x190   :  { %272 = vst.msk [vmem:[#allocation8 + $0x21] sm:$0x1] %vm117_vm2, %v241_v44 }
 0x191   :  { %v259_v50 = vcombine.high %v255_v47, %v255_v47  ;;  %271 = vst.msk [vmem:[#allocation8 + $0x19] sm:$0x1] %vm117_vm2, %v258_v49  ;;  %273 = vst.msk [vmem:[#allocation8 + $0x29] sm:$0x1] %vm117_vm2, %v255_v47 }
 0x192   :  { %274 = vst.msk [vmem:[#allocation8 + $0x31] sm:$0x1] %vm117_vm2, %v257_v48 }
 0x193   :  { %275 = vst.msk [vmem:[#allocation8 + $0x39] sm:$0x1] %vm117_vm2, %v259_v50 }
 0x25c   :  { %v344_v51 = vpop.f32.mrb[0].mxu1 }
 0x25d   :  { %v348_v52 = vadd.f32 %v344_v51, %v1639_v30  ;;  %v1321_v53 = vpop.f32.mrb[1].mxu1 }
 0x25f   :  { %1450 = vtanh.f32 %v348_v52 }
 0x269   :  { %v1451_v54 = vpop.eup %1450 }
 0x26a   :  { %v350_v55 = vmul.f32 0.1, %v1451_v54 }
 0x26c   :  { %352 = vrot.lane.b32.xlu1 %v350_v55, %s1545_s1 }
 0x2de   :  { %v353_v56 = vpop.permute.xlu1 %352 }
 0x2df   :  { %v355_v57 = vadd.f32 %v353_v56, %v344_v51 }
 0x2e1   :  { %v357_v58 = vcombine.high %v355_v57, %v355_v57  ;;  %v364_v59 = vrot.slane %v355_v57, %v1614_v15  ;;  %1331 = vmatmul.mubr.msk.f32.vlgmr.msra.gmra.mrb[2].mxu0 %vm46_vm1, %v355_v57 }
 0x2e2   :  { %1414 = vmatpush3.bf16.msra.mxu0 %v1600_v8  ;;  %1352 = vmatprep.mubr.msk.f32.mxu0 %vm1541_vm0, %v1542_v1 }
 0x2e3   :  { %v371_v60 = vrot.slane %v357_v58, %v1614_v15  ;;  %v372_v61 = vcombine.high %v364_v59, %v364_v59  ;;  %v380_v62 = vrot.slane %v364_v59, %v1614_v15  ;;  %1415 = vmatprep.subr.bf16.mxu0 %v1540_v0 }
 0x2e5   :  { %v373_v63 = vcombine.high %v371_v60, %v371_v60  ;;  %v387_v2 = vrot.slane %v371_v60, %v1614_v15  ;;  %v394_v3 = vrot.slane %v372_v61, %v1614_v15  ;;  %v402_v4 = vcombine.high %v380_v62, %v380_v62  ;;  %414 = vst.msk [vmem:[#allocation8 + $0x2] sm:$0x1] %vm117_vm2, %v380_v62 }
 0x2e6   :  { %1417 = vmatpush3.bf16.msra.mxu0 %v1607_v12 }
 0x2e7   :  { %v401_v5 = vrot.slane %v373_v63, %v1614_v15  ;;  %v403_v6 = vcombine.high %v387_v2, %v387_v2  ;;  %v404_v7 = vcombine.high %v394_v3, %v394_v3  ;;  %415 = vst.msk [vmem:[#allocation8 + $0xa] sm:$0x1] %vm117_vm2, %v394_v3  ;;  %416 = vst.msk [vmem:[#allocation8 + $0x12] sm:$0x1] %vm117_vm2, %v402_v4  ;;  %1424 = vmatprep.subr.bf16.mxu0 %v1540_v0 }
 0x2e8   :  { %418 = vst.msk [vmem:[#allocation8 + $0x22] sm:$0x1] %vm117_vm2, %v387_v2 }
 0x2e9   :  { %v405_v9 = vcombine.high %v401_v5, %v401_v5  ;;  %417 = vst.msk [vmem:[#allocation8 + $0x1a] sm:$0x1] %vm117_vm2, %v404_v7  ;;  %419 = vst.msk [vmem:[#allocation8 + $0x2a] sm:$0x1] %vm117_vm2, %v401_v5 }
 0x2ea   :  { %420 = vst.msk [vmem:[#allocation8 + $0x32] sm:$0x1] %vm117_vm2, %v403_v6 }
 0x2eb   :  { %421 = vst.msk [vmem:[#allocation8 + $0x3a] sm:$0x1] %vm117_vm2, %v405_v9 }
 0x3b4   :  { %v490_v10 = vpop.f32.mrb[2].mxu0 }
 0x3b5   :  { %v494_v11 = vadd.f32 %v490_v10, %v1639_v30  ;;  %v1332_v13 = vpop.f32.mrb[3].mxu0 }
 0x3b7   :  { %1452 = vtanh.f32 %v494_v11 }
 0x3c1   :  { %v1453_v14 = vpop.eup %1452 }
 0x3c2   :  { %v496_v16 = vmul.f32 0.1, %v1453_v14 }
 0x3c4   :  { %498 = vrot.lane.b32.xlu1 %v496_v16, %s1545_s1 }
 0x436   :  { %v499_v17 = vpop.permute.xlu1 %498 }
 0x437   :  { %v501_v18 = vadd.f32 %v499_v17, %v490_v10 }
 0x439   :  { %v503_v19 = vcombine.high %v501_v18, %v501_v18  ;;  %v510_v20 = vrot.slane %v501_v18, %v1614_v15  ;;  %1342 = vmatmul.mubr.msk.f32.vlgmr.msra.gmra.mrb[2].mxu1 %vm46_vm1, %v501_v18 }
 0x43a   :  { %1420 = vmatpush3.bf16.msra.mxu1 %v1600_v8  ;;  %1363 = vmatprep.mubr.msk.f32.mxu1 %vm1541_vm0, %v1542_v1 }
 0x43b   :  { %v517_v21 = vrot.slane %v503_v19, %v1614_v15  ;;  %v518_v22 = vcombine.high %v510_v20, %v510_v20  ;;  %v526_v23 = vrot.slane %v510_v20, %v1614_v15  ;;  %1421 = vmatprep.subr.bf16.mxu1 %v1540_v0 }
 0x43d   :  { %v519_v24 = vcombine.high %v517_v21, %v517_v21  ;;  %v533_v25 = vrot.slane %v517_v21, %v1614_v15  ;;  %v540_v26 = vrot.slane %v518_v22, %v1614_v15  ;;  %v548_v27 = vcombine.high %v526_v23, %v526_v23  ;;  %560 = vst.msk [vmem:[#allocation8 + $0x3] sm:$0x1] %vm117_vm2, %v526_v23 }
 0x43e   :  { %1423 = vmatpush3.bf16.msra.mxu1 %v1607_v12 }
 0x43f   :  { %v547_v28 = vrot.slane %v519_v24, %v1614_v15  ;;  %v549_v29 = vcombine.high %v533_v25, %v533_v25  ;;  %v550_v31 = vcombine.high %v540_v26, %v540_v26  ;;  %561 = vst.msk [vmem:[#allocation8 + $0xb] sm:$0x1] %vm117_vm2, %v540_v26  ;;  %562 = vst.msk [vmem:[#allocation8 + $0x13] sm:$0x1] %vm117_vm2, %v548_v27  ;;  %1430 = vmatprep.subr.bf16.mxu1 %v1540_v0 }
 0x440   :  { %564 = vst.msk [vmem:[#allocation8 + $0x23] sm:$0x1] %vm117_vm2, %v533_v25 }
 0x441   :  { %v551_v32 = vcombine.high %v547_v28, %v547_v28  ;;  %563 = vst.msk [vmem:[#allocation8 + $0x1b] sm:$0x1] %vm117_vm2, %v550_v31  ;;  %565 = vst.msk [vmem:[#allocation8 + $0x2b] sm:$0x1] %vm117_vm2, %v547_v28 }
 0x442   :  { %566 = vst.msk [vmem:[#allocation8 + $0x33] sm:$0x1] %vm117_vm2, %v549_v29 }
 0x443   :  { %567 = vst.msk [vmem:[#allocation8 + $0x3b] sm:$0x1] %vm117_vm2, %v551_v32 }
 0x50c   :  { %v636_v33 = vpop.f32.mrb[2].mxu1 }
 0x50d   :  { %v640_v34 = vadd.f32 %v636_v33, %v1639_v30  ;;  %v1343_v35 = vpop.f32.mrb[3].mxu1 }
 0x50f   :  { %1454 = vtanh.f32 %v640_v34 }
 0x519   :  { %v1455_v36 = vpop.eup %1454 }
 0x51a   :  { %v642_v37 = vmul.f32 0.1, %v1455_v36 }
 0x51c   :  { %644 = vrot.lane.b32.xlu0 %v642_v37, %s1545_s1 }
 0x58e   :  { %v645_v38 = vpop.permute.xlu0 %644 }
 0x58f   :  { %v647_v39 = vadd.f32 %v645_v38, %v636_v33 }
 0x591   :  { %v649_v40 = vcombine.high %v647_v39, %v647_v39  ;;  %v656_v41 = vrot.slane %v647_v39, %v1614_v15  ;;  %1353 = vmatmul.mubr.msk.f32.vlgmr.msra.gmra.mrb[4].mxu0 %vm46_vm1, %v647_v39 }
 0x592   :  { %1426 = vmatpush3.bf16.msra.mxu0 %v1600_v8  ;;  %1374 = vmatprep.mubr.msk.f32.mxu0 %vm1541_vm0, %v1542_v1 }
 0x593   :  { %v663_v42 = vrot.slane %v649_v40, %v1614_v15  ;;  %v664_v43 = vcombine.high %v656_v41, %v656_v41  ;;  %v672_v44 = vrot.slane %v656_v41, %v1614_v15  ;;  %1427 = vmatprep.subr.bf16.mxu0 %v1540_v0 }
 0x595   :  { %v665_v45 = vcombine.high %v663_v42, %v663_v42  ;;  %v679_v46 = vrot.slane %v663_v42, %v1614_v15  ;;  %v686_v47 = vrot.slane %v664_v43, %v1614_v15  ;;  %v694_v48 = vcombine.high %v672_v44, %v672_v44  ;;  %706 = vst.msk [vmem:[#allocation8 + $0x4] sm:$0x1] %vm117_vm2, %v672_v44 }
 0x596   :  { %1429 = vmatpush3.bf16.msra.mxu0 %v1607_v12 }
 0x597   :  { %v693_v49 = vrot.slane %v665_v45, %v1614_v15  ;;  %v695_v50 = vcombine.high %v679_v46, %v679_v46  ;;  %v696_v51 = vcombine.high %v686_v47, %v686_v47  ;;  %707 = vst.msk [vmem:[#allocation8 + $0xc] sm:$0x1] %vm117_vm2, %v686_v47  ;;  %708 = vst.msk [vmem:[#allocation8 + $0x14] sm:$0x1] %vm117_vm2, %v694_v48 }
 0x598   :  { %710 = vst.msk [vmem:[#allocation8 + $0x24] sm:$0x1] %vm117_vm2, %v679_v46 }
 0x599   :  { %v697_v52 = vcombine.high %v693_v49, %v693_v49  ;;  %709 = vst.msk [vmem:[#allocation8 + $0x1c] sm:$0x1] %vm117_vm2, %v696_v51  ;;  %711 = vst.msk [vmem:[#allocation8 + $0x2c] sm:$0x1] %vm117_vm2, %v693_v49 }
 0x59a   :  { %712 = vst.msk [vmem:[#allocation8 + $0x34] sm:$0x1] %vm117_vm2, %v695_v50 }
 0x59b   :  { %713 = vst.msk [vmem:[#allocation8 + $0x3c] sm:$0x1] %vm117_vm2, %v697_v52 }
 0x664   :  { %v782_v53 = vpop.f32.mrb[4].mxu0 }
 0x665   :  { %v786_v54 = vadd.f32 %v782_v53, %v1639_v30  ;;  %v1354_v55 = vpop.f32.mrb[5].mxu0 }
 0x667   :  { %1456 = vtanh.f32 %v786_v54 }
 0x671   :  { %v1457_v56 = vpop.eup %1456 }
 0x672   :  { %v788_v57 = vmul.f32 0.1, %v1457_v56 }
 0x674   :  { %790 = vrot.lane.b32.xlu1 %v788_v57, %s1545_s1 }
 0x6e6   :  { %v791_v58 = vpop.permute.xlu1 %790 }
 0x6e7   :  { %v793_v59 = vadd.f32 %v791_v58, %v782_v53 }
 0x6e9   :  { %v795_v60 = vcombine.high %v793_v59, %v793_v59  ;;  %v802_v61 = vrot.slane %v793_v59, %v1614_v15  ;;  %1364 = vmatmul.mubr.msk.f32.vlgmr.msra.gmra.mrb[4].mxu1 %vm46_vm1, %v793_v59 }
 0x6ea   :  { %1432 = vmatpush3.bf16.msra.mxu1 %v1600_v8  ;;  %1385 = vmatprep.mubr.msk.f32.mxu1 %vm1541_vm0, %v1542_v1 }
 0x6eb   :  { %v809_v62 = vrot.slane %v795_v60, %v1614_v15  ;;  %v810_v63 = vcombine.high %v802_v61, %v802_v61  ;;  %v818_v2 = vrot.slane %v802_v61, %v1614_v15  ;;  %1433 = vmatprep.subr.bf16.mxu1 %v1540_v0 }
 0x6ed   :  { %v811_v3 = vcombine.high %v809_v62, %v809_v62  ;;  %v825_v4 = vrot.slane %v809_v62, %v1614_v15  ;;  %v832_v5 = vrot.slane %v810_v63, %v1614_v15  ;;  %v840_v6 = vcombine.high %v818_v2, %v818_v2  ;;  %852 = vst.msk [vmem:[#allocation8 + $0x5] sm:$0x1] %vm117_vm2, %v818_v2 }
 0x6ee   :  { %1435 = vmatpush3.bf16.msra.mxu1 %v1607_v12 }
 0x6ef   :  { %v839_v8 = vrot.slane %v811_v3, %v1614_v15  ;;  %v841_v1 = vcombine.high %v825_v4, %v825_v4  ;;  %v842_v7 = vcombine.high %v832_v5, %v832_v5  ;;  %853 = vst.msk [vmem:[#allocation8 + $0xd] sm:$0x1] %vm117_vm2, %v832_v5  ;;  %854 = vst.msk [vmem:[#allocation8 + $0x15] sm:$0x1] %vm117_vm2, %v840_v6 }
 0x6f0   :  { %856 = vst.msk [vmem:[#allocation8 + $0x25] sm:$0x1] %vm117_vm2, %v825_v4 }
 0x6f1   :  { %v843_v0 = vcombine.high %v839_v8, %v839_v8  ;;  %855 = vst.msk [vmem:[#allocation8 + $0x1d] sm:$0x1] %vm117_vm2, %v842_v7  ;;  %857 = vst.msk [vmem:[#allocation8 + $0x2d] sm:$0x1] %vm117_vm2, %v839_v8 }
 0x6f2   :  { %858 = vst.msk [vmem:[#allocation8 + $0x35] sm:$0x1] %vm117_vm2, %v841_v1 }
 0x6f3   :  { %859 = vst.msk [vmem:[#allocation8 + $0x3d] sm:$0x1] %vm117_vm2, %v843_v0 }
 0x7bc   :  { %v928_v12 = vpop.f32.mrb[4].mxu1 }
 0x7bd   :  { %v932_v9 = vadd.f32 %v928_v12, %v1639_v30  ;;  %v1365_v10 = vpop.f32.mrb[5].mxu1 }
 0x7bf   :  { %1458 = vtanh.f32 %v932_v9 }
 0x7c9   :  { %v1459_v11 = vpop.eup %1458 }
 0x7ca   :  { %v934_v13 = vmul.f32 0.1, %v1459_v11 }
 0x7cc   :  { %936 = vrot.lane.b32.xlu0 %v934_v13, %s1545_s1 }
 0x83e   :  { %v937_v14 = vpop.permute.xlu0 %936 }
 0x83f   :  { %v939_v16 = vadd.f32 %v937_v14, %v928_v12 }
 0x841   :  { %v941_v17 = vcombine.high %v939_v16, %v939_v16  ;;  %v948_v18 = vrot.slane %v939_v16, %v1614_v15  ;;  %1375 = vmatmul.mubr.msk.f32.vlgmr.msra.gmra.mrb[6].mxu0 %vm46_vm1, %v939_v16 }
 0x843   :  { %v955_v19 = vrot.slane %v941_v17, %v1614_v15  ;;  %v956_v20 = vcombine.high %v948_v18, %v948_v18  ;;  %v964_v21 = vrot.slane %v948_v18, %v1614_v15 }
 0x845   :  { %v957_v22 = vcombine.high %v955_v19, %v955_v19  ;;  %v971_v23 = vrot.slane %v955_v19, %v1614_v15  ;;  %v978_v24 = vrot.slane %v956_v20, %v1614_v15  ;;  %v986_v25 = vcombine.high %v964_v21, %v964_v21  ;;  %998 = vst.msk [vmem:[#allocation8 + $0x6] sm:$0x1] %vm117_vm2, %v964_v21 }
 0x847   :  { %v985_v26 = vrot.slane %v957_v22, %v1614_v15  ;;  %v987_v27 = vcombine.high %v971_v23, %v971_v23  ;;  %v988_v28 = vcombine.high %v978_v24, %v978_v24  ;;  %999 = vst.msk [vmem:[#allocation8 + $0xe] sm:$0x1] %vm117_vm2, %v978_v24  ;;  %1000 = vst.msk [vmem:[#allocation8 + $0x16] sm:$0x1] %vm117_vm2, %v986_v25 }
 0x848   :  { %1002 = vst.msk [vmem:[#allocation8 + $0x26] sm:$0x1] %vm117_vm2, %v971_v23 }
 0x849   :  { %v989_v29 = vcombine.high %v985_v26, %v985_v26  ;;  %1001 = vst.msk [vmem:[#allocation8 + $0x1e] sm:$0x1] %vm117_vm2, %v988_v28  ;;  %1003 = vst.msk [vmem:[#allocation8 + $0x2e] sm:$0x1] %vm117_vm2, %v985_v26 }
 0x84a   :  { %1004 = vst.msk [vmem:[#allocation8 + $0x36] sm:$0x1] %vm117_vm2, %v987_v27 }
 0x84b   :  { %1005 = vst.msk [vmem:[#allocation8 + $0x3e] sm:$0x1] %vm117_vm2, %v989_v29 }
 0x914   :  { %v1074_v31 = vpop.f32.mrb[6].mxu0 }
 0x915   :  { %v1078_v32 = vadd.f32 %v1074_v31, %v1639_v30  ;;  %v1376_v33 = vpop.f32.mrb[7].mxu0 }
 0x917   :  { %1460 = vtanh.f32 %v1078_v32 }
 0x921   :  { %v1461_v34 = vpop.eup %1460 }
 0x922   :  { %v1080_v35 = vmul.f32 0.1, %v1461_v34 }
 0x924   :  { %1082 = vrot.lane.b32.xlu1 %v1080_v35, %s1545_s1 }
 0x996   :  { %v1083_v36 = vpop.permute.xlu1 %1082 }
 0x997   :  { %v1085_v37 = vadd.f32 %v1083_v36, %v1074_v31 }
 0x999   :  { %v1087_v38 = vcombine.high %v1085_v37, %v1085_v37  ;;  %v1094_v39 = vrot.slane %v1085_v37, %v1614_v15  ;;  %1386 = vmatmul.mubr.msk.f32.vlgmr.msra.gmra.mrb[6].mxu1 %vm46_vm1, %v1085_v37 }
 0x99b   :  { %v1101_v40 = vrot.slane %v1087_v38, %v1614_v15  ;;  %v1102_v41 = vcombine.high %v1094_v39, %v1094_v39  ;;  %v1110_v42 = vrot.slane %v1094_v39, %v1614_v15 }
 0x99d   :  { %v1103_v43 = vcombine.high %v1101_v40, %v1101_v40  ;;  %v1117_v44 = vrot.slane %v1101_v40, %v1614_v15  ;;  %v1124_v45 = vrot.slane %v1102_v41, %v1614_v15  ;;  %v1132_v46 = vcombine.high %v1110_v42, %v1110_v42  ;;  %1144 = vst.msk [vmem:[#allocation8 + $0x7] sm:$0x1] %vm117_vm2, %v1110_v42 }
 0x99f   :  { %v1131_v47 = vrot.slane %v1103_v43, %v1614_v15  ;;  %v1133_v48 = vcombine.high %v1117_v44, %v1117_v44  ;;  %v1134_v49 = vcombine.high %v1124_v45, %v1124_v45  ;;  %1145 = vst.msk [vmem:[#allocation8 + $0xf] sm:$0x1] %vm117_vm2, %v1124_v45  ;;  %1146 = vst.msk [vmem:[#allocation8 + $0x17] sm:$0x1] %vm117_vm2, %v1132_v46 }
 0x9a0   :  { %1148 = vst.msk [vmem:[#allocation8 + $0x27] sm:$0x1] %vm117_vm2, %v1117_v44 }
 0x9a1   :  { %v1135_v50 = vcombine.high %v1131_v47, %v1131_v47  ;;  %1147 = vst.msk [vmem:[#allocation8 + $0x1f] sm:$0x1] %vm117_vm2, %v1134_v49  ;;  %1149 = vst.msk [vmem:[#allocation8 + $0x2f] sm:$0x1] %vm117_vm2, %v1131_v47 }
 0x9a2   :  { %1150 = vst.msk [vmem:[#allocation8 + $0x37] sm:$0x1] %vm117_vm2, %v1133_v48 }
 0x9a3   :  { %1151 = vst.msk [vmem:[#allocation8 + $0x3f] sm:$0x1] %vm117_vm2, %v1135_v50 }
 0xa6c   :  { %v1220_v51 = vpop.f32.mrb[6].mxu1 }
 0xa6d   :  { %v1224_v15 = vadd.f32 %v1220_v51, %v1639_v30  ;;  %v1387_v52 = vpop.f32.mrb[7].mxu1 }
 0xa6f   :  { %1462 = vtanh.f32 %v1224_v15 }
 0xa70   :  { %1519 = shalt.err (!%p1516_p6)
}
 0xa71   :  { %s1520_s17 = scalar_lea.hbm %s1809_s3, 1024 }
 0xa72   :  { %p1521_p7 = scmp.ne.s32.totalorder %s1809_s3, %s1520_s17  ;;  %p1524_p8 = scmp.lt.u32.totalorder %s1520_s17, %s1809_s3 }
 0xa74   :  { %p1526_p9 = pnand %p1524_p8, %p1521_p7 }
 0xa76   :  { %1529 = shalt.err (!%p1526_p9)
}
 0xa77   :  { %1244 = dma.vmem_to_hbm [thread:$0]  %s1239_s13, 1024, %s1809_s3, [#allocation5], %s1537_s22, %s1537_s22, %s1538_s23  }
 0xa79   :  { %v1463_v30 = vpop.eup %1462 }
 0xa7a   :  { %v1226_v53 = vmul.f32 0.1, %v1463_v30 }
 0xa7c   :  { %1228 = vrot.lane.b32.xlu0 %v1226_v53, %s1545_s1 }
 0xaee   :  { %v1229_v54 = vpop.permute.xlu0 %1228 }
 0xaef   :  { %v1231_v55 = vadd.f32 %v1229_v54, %v1220_v51 }
 0xaf1   :  { %1232 = vst.msk [vmem:[#allocation2] sm:$0xff] %vm46_vm1, %v1231_v55 }
 0xaf2   :  { %1534 = dma.done.wait [#allocation5], 1024  }
 0xaf3   :  { %1535 = vsyncadd [#allocation5], 4294966272 }
 0xaf4   :  { %1248 = vsyncpa [#allocation4], 1 }
 0xaf5   :  { %1249 = vsyncpa [#allocation7], 1 }
 0xaf6   :  { %1250 = vsyncpa [#allocation5], 1 }

</bundles_post_ra>
